<compile_context>
chip_gen: v7x
topology: tpu7x:2x2x1
jax: 0.10.0
libtpu: 0.0.40
codegen_flags: <defaults>
</compile_context>

<pallas_src>
import functools

import jax
import jax.numpy as jnp
from jax.experimental import pallas as pl
from jax.experimental.pallas import tpu as pltpu

LANE = 128
BN_EPS = 1e-5
MIB = 1024 * 1024


def _round_up(v, m):
    return ((v + m - 1) // m) * m


def _device_cfg():
    """Generation-aware tile sizes and scoped-VMEM budget."""
    try:
        kind = jax.devices()[0].device_kind.lower()
    except Exception:
        kind = ""
    if "v6" in kind:          # 128 MiB VMEM, most BW-starved vs its MXU
        return {"tm": 512, "tk": 2048, "vmem": 80 * MIB}
    if "v5" in kind or "v4" in kind or "v3" in kind:   # 128 MiB VMEM
        return {"tm": 256, "tk": 1024, "vmem": 64 * MIB}
    # v7x (64 MiB VMEM per TensorCore) and unknown chips: stay conservative.
    return {"tm": 256, "tk": 1024, "vmem": 44 * MIB}


def _const_spec(shape):
    """Grid-invariant (fetched-once) full-array operand."""
    # TODO(synk): mark these pl.Buffered(1) once single-buffered pipeline_mode
    # is universally supported; reclaims the redundant second VMEM buffer.
    return pl.BlockSpec(shape, lambda *_: (0,) * len(shape))


# ----------------------------------------------------------------------------
# Pallas kernels
# ----------------------------------------------------------------------------
def gin_layer_kernel(a_ref, h_ref, p_ref, w1_ref, b1_ref, ea_ref, eb_ref,
                     *out_and_scratch, has_w2, write_h):
    """One (row-tile, k-tile) step of a GIN layer with global_add_pool fused.

    a_ref : (TM, TK)  int8  adjacency block, self term folded on the diagonal
    h_ref : (TK, Fin) bf16  previous-layer activations, contraction strip
    p_ref : (G, TM)   bf16  pooling-matrix column strip
    w1_ref: (Fin, M)  bf16  first linear weight;  b1_ref: (1, M) f32 bias
    has_w2=True : ea/eb = BN-folded second linear weight (M, Fout) bf16 / bias f32
    has_w2=False: ea/eb = BN scale / shift (1, Fout) f32 (conv3: Linear+ReLU only)
    outputs: [h_out (TM, Fout) bf16 if write_h], pooled partial (1, G, Fout) f32
    scratch: acc (TM, Fin) f32 aggregation accumulator
    """
    if write_h:
        h_out_ref, pooled_ref, acc_ref = out_and_scratch
    else:
        pooled_ref, acc_ref = out_and_scratch

    k = pl.program_id(1)

    @pl.when(k == 0)
    def _():
        acc_ref[...] = jnp.zeros_like(acc_ref)

    # Aggregation partial sum.  A is streamed as int8 (halves HBM traffic);
    # the s8 -> bf16 upcast is VPU work hidden under the MXU matmul.
    a_blk = a_ref[...].astype(jnp.bfloat16)
    acc_ref[...] += jnp.dot(a_blk, h_ref[...], preferred_element_type=jnp.float32)

    @pl.when(k == pl.num_programs(1) - 1)
    def _():
        agg = acc_ref[...]
        # MLP first linear + ReLU.
        z = jnp.dot(agg.astype(jnp.bfloat16), w1_ref[...],
                    preferred_element_type=jnp.float32) + b1_ref[...]
        z = jnp.maximum(z, 0.0)
        if has_w2:
            # Second linear with BatchNorm (inference) pre-folded, then ReLU.
            h = jnp.dot(z.astype(jnp.bfloat16), ea_ref[...],
                        preferred_element_type=jnp.float32) + eb_ref[...]
            h = jnp.maximum(h, 0.0)
        else:
            # conv3: MLP is Linear+ReLU only -> BN affine + ReLU applied here.
            h = jnp.maximum(z * ea_ref[...] + eb_ref[...], 0.0)

        h_bf = h.astype(jnp.bfloat16)
        if write_h:
            h_out_ref[...] = h_bf
        # Fused global_add_pool: per-row-tile partial, reduced (tiny) outside.
        pooled_ref[...] = jnp.dot(p_ref[...], h_bf,
                                  preferred_element_type=jnp.float32)[None]


def readout_kernel(p1_ref, p2_ref, p3_ref, wa_ref, wb_ref, wc_ref, b1_ref,
                   w2_ref, b2_ref, out_ref):
    """concat([pool1, pool2, pool3]) @ Wl1 + b -> ReLU -> @ Wl2 + b (tiny)."""
    h = (jnp.dot(p1_ref[...].astype(jnp.bfloat16), wa_ref[...],
                 preferred_element_type=jnp.float32)
         + jnp.dot(p2_ref[...].astype(jnp.bfloat16), wb_ref[...],
                   preferred_element_type=jnp.float32)
         + jnp.dot(p3_ref[...].astype(jnp.bfloat16), wc_ref[...],
                   preferred_element_type=jnp.float32)
         + b1_ref[...])
    h = jnp.maximum(h, 0.0)
    out_ref[...] = jnp.dot(h.astype(jnp.bfloat16), w2_ref[...],
                           preferred_element_type=jnp.float32) + b2_ref[...]


# ----------------------------------------------------------------------------
# Wrappers (BlockSpecs / grid)
# ----------------------------------------------------------------------------
def gin_layer(a, h_in, p, w1, b1, ea, eb, *, has_w2, write_h, tm, tk, vmem_bytes):
    n_pad = a.shape[0]
    fin = h_in.shape[1]
    g = p.shape[0]
    out_dim = ea.shape[1] if has_w2 else w1.shape[1]
    n_i = n_pad // tm
    n_k = n_pad // tk

    in_specs = [
        pl.BlockSpec((tm, tk), lambda i, k: (i, k)),     # A block (int8)
        pl.BlockSpec((tk, fin), lambda i, k: (k, 0)),    # prev activations strip
        pl.BlockSpec((g, tm), lambda i, k: (0, i)),      # pooling columns
        _const_spec(w1.shape), _const_spec(b1.shape),
        _const_spec(ea.shape), _const_spec(eb.shape),
    ]

    pooled_shape = jax.ShapeDtypeStruct((n_i, g, out_dim), jnp.float32)
    pooled_spec = pl.BlockSpec((1, g, out_dim), lambda i, k: (i, 0, 0))
    if write_h:
        out_shape = (jax.ShapeDtypeStruct((n_pad, out_dim), jnp.bfloat16),
                     pooled_shape)
        out_specs = (pl.BlockSpec((tm, out_dim), lambda i, k: (i, 0)), pooled_spec)
    else:
        out_shape = pooled_shape
        out_specs = pooled_spec

    kernel = functools.partial(gin_layer_kernel, has_w2=has_w2, write_h=write_h)
    return pl.pallas_call(
        kernel,
        out_shape=out_shape,
        grid=(n_i, n_k),
        in_specs=in_specs,
        out_specs=out_specs,
        scratch_shapes=[pltpu.VMEM((tm, fin), jnp.float32)],
        compiler_params=pltpu.CompilerParams(
            dimension_semantics=("parallel", "arbitrary"),
            vmem_limit_bytes=vmem_bytes),
    )(a, h_in, p, w1, b1, ea, eb)


def readout(p1, p2, p3, wa, wb, wc, b1, w2, b2):
    g = p1.shape[0]
    c_pad = w2.shape[1]
    args = (p1, p2, p3, wa, wb, wc, b1, w2, b2)
    return pl.pallas_call(
        readout_kernel,
        out_shape=jax.ShapeDtypeStruct((g, c_pad), jnp.float32),
        grid=(1,),
        in_specs=[_const_spec(v.shape) for v in args],
        out_specs=_const_spec((g, c_pad)),
    )(*args)


# ----------------------------------------------------------------------------
# Parameters: raw (PyTorch-like) and prepared (BN-folded, padded, bf16)
# ----------------------------------------------------------------------------
def make_params(key, num_node_features, dim_h, num_classes):
    def nrm(k, shape, scale=0.1):
        return (scale * jax.random.normal(k, shape)).astype(jnp.float32)

    ks = jax.random.split(key, 20)
    F, H, C = num_node_features, dim_h, num_classes
    return {
        "c1_lin1_w": nrm(ks[0], (F, H)), "c1_lin1_b": nrm(ks[1], (H,)),
        "c1_lin2_w": nrm(ks[2], (H, H)), "c1_lin2_b": nrm(ks[3], (H,)),
        "bn1_gamma": 1.0 + nrm(ks[4], (H,)), "bn1_beta": nrm(ks[5], (H,)),
        "c2_lin1_w": nrm(ks[6], (H, H)), "c2_lin1_b": nrm(ks[7], (H,)),
        "c2_lin2_w": nrm(ks[8], (H, H)), "c2_lin2_b": nrm(ks[9], (H,)),
        "bn2_gamma": 1.0 + nrm(ks[10], (H,)), "bn2_beta": nrm(ks[11], (H,)),
        "c3_lin1_w": nrm(ks[12], (H, 512)), "c3_lin1_b": nrm(ks[13], (512,)),
        "bn3_gamma": 1.0 + nrm(ks[14], (512,)), "bn3_beta": nrm(ks[15], (512,)),
        "lin1_w": nrm(ks[16], (2 * H + 512, 1024)), "lin1_b": nrm(ks[17], (1024,)),
        "lin2_w": nrm(ks[18], (1024, C)), "lin2_b": nrm(ks[19], (C,)),
    }


def prepare_params(raw, num_node_features, dim_h, num_classes):
    """Fold BN(eval) into weights, zero-pad feature dims to 128 lanes, cast
    matmul weights to bf16 (biases / BN affine stay f32)."""
    F, H, C = num_node_features, dim_h, num_classes
    Fp, Hp, Cp = _round_up(F, LANE), _round_up(H, LANE), _round_up(C, LANE)

    def padw(w, rows, cols, dtype):
        return jnp.pad(w, ((0, rows - w.shape[0]),
                           (0, cols - w.shape[1]))).astype(dtype)

    def padb(b, cols):
        return jnp.pad(b, (0, cols - b.shape[0])).reshape(1, -1).astype(jnp.float32)

    # TODO(synk): BatchNorm1d inference assumed fresh (running_mean=0, var=1);
    # with trained running stats fold them into s*/shift here.
    s1 = raw["bn1_gamma"] / jnp.sqrt(1.0 + BN_EPS)
    s2 = raw["bn2_gamma"] / jnp.sqrt(1.0 + BN_EPS)
    s3 = raw["bn3_gamma"] / jnp.sqrt(1.0 + BN_EPS)

    return {
        # conv1 / bn1 (BN folded into second linear)
        "c1_w1": padw(raw["c1_lin1_w"], Fp, Hp, jnp.bfloat16),
        "c1_b1": padb(raw["c1_lin1_b"], Hp),
        "c1_w2f": padw(raw["c1_lin2_w"] * s1[None, :], Hp, Hp, jnp.bfloat16),
        "c1_b2f": padb(raw["c1_lin2_b"] * s1 + raw["bn1_beta"], Hp),
        # conv2 / bn2
        "c2_w1": padw(raw["c2_lin1_w"], Hp, Hp, jnp.bfloat16),
        "c2_b1": padb(raw["c2_lin1_b"], Hp),
        "c2_w2f": padw(raw["c2_lin2_w"] * s2[None, :], Hp, Hp, jnp.bfloat16),
        "c2_b2f": padb(raw["c2_lin2_b"] * s2 + raw["bn2_beta"], Hp),
        # conv3 / bn3 (no second linear; BN kept as affine since ReLU precedes it)
        "c3_w1": padw(raw["c3_lin1_w"], Hp, 512, jnp.bfloat16),
        "c3_b1": padb(raw["c3_lin1_b"], 512),
        "c3_scale": s3.reshape(1, -1).astype(jnp.float32),
        "c3_shift": raw["bn3_beta"].reshape(1, -1).astype(jnp.float32),
        # readout lin1 split to match concat([pool1, pool2, pool3]); bf16 weights
        "lin1_wa": padw(raw["lin1_w"][:H], Hp, 1024, jnp.bfloat16),
        "lin1_wb": padw(raw["lin1_w"][H:2 * H], Hp, 1024, jnp.bfloat16),
        "lin1_wc": raw["lin1_w"][2 * H:].astype(jnp.bfloat16),
        "lin1_b": raw["lin1_b"].reshape(1, -1).astype(jnp.float32),
        "lin2_w": padw(raw["lin2_w"], 1024, Cp, jnp.bfloat16),
        "lin2_b": padb(raw["lin2_b"], Cp),
    }


# ----------------------------------------------------------------------------
# Forward pass (graph -> dense operators is plain JAX glue)
# ----------------------------------------------------------------------------
def gin_forward(prep, x, edge_index, batch, num_graphs, num_classes, cfg=None):
    n, f = x.shape
    cfg = dict(cfg or _device_cfg())
    n128 = _round_up(n, LANE)
    tm, tk = cfg["tm"], cfg["tk"]
    while tm > n128:       # tiles are 128 * 2^j, so clamping keeps divisibility
        tm //= 2
    while tk > n128:
        tk //= 2
    n_pad = _round_up(n, max(tm, tk))
    f_pad = _round_up(f, LANE)
    g_pad = _round_up(max(num_graphs, 8), 8)

    # A[dst, src] = edge multiplicity; GIN self term ((1+eps)*x, eps=0) folded
    # in by appending one self-loop per real node -> single scatter pass.
    # Streamed to the kernel as int8 (halves A's HBM bytes).
    # TODO(synk): assumes edge multiplicity (+1 on the diagonal) <= 127.
    nodes = jnp.arange(n, dtype=edge_index.dtype)
    src = jnp.concatenate([edge_index[0], nodes])
    dst = jnp.concatenate([edge_index[1], nodes])
    a = (jnp.zeros((n_pad, n_pad), jnp.int32)
         .at[dst, src].add(1)
         .astype(jnp.int8))

    # Pooling operator P[g, node] = 1 iff batch[node] == g (0 on padded cols).
    p = (jnp.zeros((g_pad, n_pad), jnp.float32)
         .at[batch, jnp.arange(n)].set(1.0)
         .astype(jnp.bfloat16))

    x_p = jnp.pad(x, ((0, n_pad - n), (0, f_pad - f))).astype(jnp.bfloat16)

    lyr = functools.partial(gin_layer, tm=tm, tk=tk, vmem_bytes=cfg["vmem"])

    # TODO(synk): F.dropout(p=0.1) is identity in inference mode; not applied.
    h1, pool1 = lyr(a, x_p, p, prep["c1_w1"], prep["c1_b1"],
                    prep["c1_w2f"], prep["c1_b2f"], has_w2=True, write_h=True)
    h2, pool2 = lyr(a, h1, p, prep["c2_w1"], prep["c2_b1"],
                    prep["c2_w2f"], prep["c2_b2f"], has_w2=True, write_h=True)
    # conv3 = Sequential(Linear, ReLU): no second linear, h3 never hits HBM.
    pool3 = lyr(a, h2, p, prep["c3_w1"], prep["c3_b1"],
                prep["c3_scale"], prep["c3_shift"], has_w2=False, write_h=False)

    p1 = jnp.sum(pool1, axis=0)   # tiny (T, G, D) -> (G, D) cross-tile reduce
    p2 = jnp.sum(pool2, axis=0)
    p3 = jnp.sum(pool3, axis=0)

    out = readout(p1, p2, p3, prep["lin1_wa"], prep["lin1_wb"], prep["lin1_wc"],
                  prep["lin1_b"], prep["lin2_w"], prep["lin2_b"])
    return out[:num_graphs, :num_classes]


# ----------------------------------------------------------------------------
# Pure-JAX f32 reference (matches the PyTorch forward, inference mode)
# ----------------------------------------------------------------------------
def gin_reference(raw, x, edge_index, batch, num_graphs):
    n = x.shape[0]
    a = jnp.zeros((n, n), jnp.float32).at[edge_index[1], edge_index[0]].add(1.0)
    pool = jnp.zeros((num_graphs, n), jnp.float32).at[batch, jnp.arange(n)].set(1.0)

    def bn(h, gamma, beta):
        return h * (gamma / jnp.sqrt(1.0 + BN_EPS)) + beta

    agg1 = a @ x + x
    h1 = jnp.maximum(agg1 @ raw["c1_lin1_w"] + raw["c1_lin1_b"], 0.0)
    h1 = h1 @ raw["c1_lin2_w"] + raw["c1_lin2_b"]
    h1 = jnp.maximum(bn(h1, raw["bn1_gamma"], raw["bn1_beta"]), 0.0)

    agg2 = a @ h1 + h1
    h2 = jnp.maximum(agg2 @ raw["c2_lin1_w"] + raw["c2_lin1_b"], 0.0)
    h2 = h2 @ raw["c2_lin2_w"] + raw["c2_lin2_b"]
    h2 = jnp.maximum(bn(h2, raw["bn2_gamma"], raw["bn2_beta"]), 0.0)

    agg3 = a @ h2 + h2
    h3 = jnp.maximum(agg3 @ raw["c3_lin1_w"] + raw["c3_lin1_b"], 0.0)
    h3 = jnp.maximum(bn(h3, raw["bn3_gamma"], raw["bn3_beta"]), 0.0)

    hcat = jnp.concatenate([pool @ h1, pool @ h2, pool @ h3], axis=1)
    h = jnp.maximum(hcat @ raw["lin1_w"] + raw["lin1_b"], 0.0)
    return h @ raw["lin2_w"] + raw["lin2_b"]


if __name__ == "__main__":
    num_node_features = 8
    dim_h = 32
    num_classes = 3
    num_nodes = 16
    num_edges = 40
    num_graphs = 2

    key = jax.random.PRNGKey(0)
    k_x, k_src, k_dst, k_params = jax.random.split(key, 4)

    x = jax.random.normal(k_x, (num_nodes, num_node_features), dtype=jnp.float32)
    src = jax.random.randint(k_src, (num_edges,), 0, num_nodes)
    dst = jax.random.randint(k_dst, (num_edges,), 0, num_nodes)
    edge_index = jnp.stack([src, dst], axis=0)              # (2, E)
    batch = jnp.concatenate([jnp.zeros(num_nodes // 2, jnp.int32),
                             jnp.ones(num_nodes - num_nodes // 2, jnp.int32)])

    raw = make_params(k_params, num_node_features, dim_h, num_classes)
    prep = prepare_params(raw, num_node_features, dim_h, num_classes)

    out = gin_forward(prep, x, edge_index, batch, num_graphs, num_classes)
    out = jax.block_until_ready(out)

    ref = gin_reference(raw, x, edge_index, batch, num_graphs)
    assert out.shape == (num_graphs, num_classes)
    assert bool(jnp.all(jnp.isfinite(out)))
    assert bool(jnp.allclose(out, ref, rtol=0.05, atol=0.25)), (
        f"max abs diff {float(jnp.max(jnp.abs(out - ref)))}")
    print("KERNEL_OK")
</pallas_src>

<mosaic_0001>
module attributes {stable_mosaic.version = 11 : i64} {
  func.func @gin_layer_kernel(%arg0: i32, %arg1: i32, %arg2: memref<128x128xi8, #tpu.memory_space<vmem>>, %arg3: memref<128x128xbf16, #tpu.memory_space<vmem>>, %arg4: memref<8x128xbf16, #tpu.memory_space<vmem>>, %arg5: memref<128x128xbf16, #tpu.memory_space<vmem>>, %arg6: memref<1x128xf32, #tpu.memory_space<vmem>>, %arg7: memref<128x128xbf16, #tpu.memory_space<vmem>>, %arg8: memref<1x128xf32, #tpu.memory_space<vmem>>, %arg9: memref<128x128xbf16, #tpu.memory_space<vmem>>, %arg10: memref<1x8x128xf32, #tpu.memory_space<vmem>>, %arg11: memref<128x128xf32, #tpu.memory_space<vmem>>) attributes {dimension_semantics = [#tpu.dimension_semantics<parallel>, #tpu.dimension_semantics<arbitrary>], iteration_bounds = array<i64: 1, 1>, scalar_prefetch = 0 : i64, scratch_operands = 1 : i64, tpu.core_type = #tpu.core_type<tc>, window_params = [{transform_indices = @transform_0, window_bounds = array<i64: 128, 128>}, {transform_indices = @transform_1, window_bounds = array<i64: 128, 128>}, {transform_indices = @transform_2, window_bounds = array<i64: 8, 128>}, {pipeline_mode = #tpu.pipeline_mode<synchronous>, transform_indices = @transform_3, window_bounds = array<i64: 128, 128>}, {pipeline_mode = #tpu.pipeline_mode<synchronous>, transform_indices = @transform_4, window_bounds = array<i64: 1, 128>}, {pipeline_mode = #tpu.pipeline_mode<synchronous>, transform_indices = @transform_5, window_bounds = array<i64: 128, 128>}, {pipeline_mode = #tpu.pipeline_mode<synchronous>, transform_indices = @transform_6, window_bounds = array<i64: 1, 128>}, {transform_indices = @transform_7, window_bounds = array<i64: 128, 128>}, {transform_indices = @transform_8, window_bounds = array<i64: 1, 8, 128>}]} {
    %c0_i32 = arith.constant 0 : i32
    %0 = arith.cmpi eq, %arg1, %c0_i32 : i32
    %1 = arith.extui %0 : i1 to i32
    %c0_i32_0 = arith.constant 0 : i32
    %2 = arith.cmpi ne, %1, %c0_i32_0 : i32
    scf.if %2 {
      %cst_10 = arith.constant 0.000000e+00 : f32
      %13 = vector.broadcast %cst_10 : f32 to vector<128x128xf32>
      %c0_11 = arith.constant 0 : index
      %c0_12 = arith.constant 0 : index
      %14 = vector.load %arg11[%c0_11, %c0_12] : memref<128x128xf32, #tpu.memory_space<vmem>>, vector<128x128xf32>
      tpu.vector_store %arg11[%c0_11, %c0_12], %13 {strides = array<i32>} : memref<128x128xf32, #tpu.memory_space<vmem>>, vector<128x128xf32>,
    } else {
    }
    %c0 = arith.constant 0 : index
    %c0_1 = arith.constant 0 : index
    %3 = vector.load %arg2[%c0, %c0_1] : memref<128x128xi8, #tpu.memory_space<vmem>>, vector<128x128xi8>
    %4 = arith.sitofp %3 : vector<128x128xi8> to vector<128x128xbf16>
    %c0_2 = arith.constant 0 : index
    %c0_3 = arith.constant 0 : index
    %5 = vector.load %arg11[%c0_2, %c0_3] : memref<128x128xf32, #tpu.memory_space<vmem>>, vector<128x128xf32>
    %c0_4 = arith.constant 0 : index
    %c0_5 = arith.constant 0 : index
    %6 = vector.load %arg3[%c0_4, %c0_5] : memref<128x128xbf16, #tpu.memory_space<vmem>>, vector<128x128xbf16>
    %cst = arith.constant dense<0.000000e+00> : vector<128x128xf32>
    %7 = tpu.matmul %4, %6, %cst {dimension_numbers = #tpu.dot_dimension_numbers<[1], [0], [0], [1], [0, 0, 1, 1], [], []>} : vector<128x128xbf16>, vector<128x128xbf16>, vector<128x128xf32> -> vector<128x128xf32>
    %8 = arith.addf %5, %7 : vector<128x128xf32>
    %c0_6 = arith.constant 0 : index
    %c0_7 = arith.constant 0 : index
    %9 = vector.load %arg11[%c0_6, %c0_7] : memref<128x128xf32, #tpu.memory_space<vmem>>, vector<128x128xf32>
    tpu.vector_store %arg11[%c0_6, %c0_7], %8 {strides = array<i32>} : memref<128x128xf32, #tpu.memory_space<vmem>>, vector<128x128xf32>,
    %c0_i32_8 = arith.constant 0 : i32
    %10 = arith.cmpi eq, %arg1, %c0_i32_8 : i32
    %11 = arith.extui %10 : i1 to i32
    %c0_i32_9 = arith.constant 0 : i32
    %12 = arith.cmpi ne, %11, %c0_i32_9 : i32
    scf.if %12 {
      %c0_10 = arith.constant 0 : index
      %c0_11 = arith.constant 0 : index
      %13 = vector.load %arg11[%c0_10, %c0_11] : memref<128x128xf32, #tpu.memory_space<vmem>>, vector<128x128xf32>
      %14 = arith.truncf %13 : vector<128x128xf32> to vector<128x128xbf16>
      %c0_12 = arith.constant 0 : index
      %c0_13 = arith.constant 0 : index
      %15 = vector.load %arg5[%c0_12, %c0_13] : memref<128x128xbf16, #tpu.memory_space<vmem>>, vector<128x128xbf16>
      %cst_14 = arith.constant dense<0.000000e+00> : vector<128x128xf32>
      %16 = tpu.matmul %14, %15, %cst_14 {dimension_numbers = #tpu.dot_dimension_numbers<[1], [0], [0], [1], [0, 0, 1, 1], [], []>} : vector<128x128xbf16>, vector<128x128xbf16>, vector<128x128xf32> -> vector<128x128xf32>
      %c0_15 = arith.constant 0 : index
      %c0_16 = arith.constant 0 : index
      %17 = vector.load %arg6[%c0_15, %c0_16] : memref<1x128xf32, #tpu.memory_space<vmem>>, vector<1x128xf32>
      %18 = vector.broadcast %17 : vector<1x128xf32> to vector<128x128xf32>
      %19 = arith.addf %16, %18 : vector<128x128xf32>
      %cst_17 = arith.constant 0.000000e+00 : f32
      %20 = vector.broadcast %cst_17 : f32 to vector<128x128xf32>
      %21 = arith.maximumf %19, %20 : vector<128x128xf32>
      %22 = arith.truncf %21 : vector<128x128xf32> to vector<128x128xbf16>
      %c0_18 = arith.constant 0 : index
      %c0_19 = arith.constant 0 : index
      %23 = vector.load %arg7[%c0_18, %c0_19] : memref<128x128xbf16, #tpu.memory_space<vmem>>, vector<128x128xbf16>
      %cst_20 = arith.constant dense<0.000000e+00> : vector<128x128xf32>
      %24 = tpu.matmul %22, %23, %cst_20 {dimension_numbers = #tpu.dot_dimension_numbers<[1], [0], [0], [1], [0, 0, 1, 1], [], []>} : vector<128x128xbf16>, vector<128x128xbf16>, vector<128x128xf32> -> vector<128x128xf32>
      %c0_21 = arith.constant 0 : index
      %c0_22 = arith.constant 0 : index
      %25 = vector.load %arg8[%c0_21, %c0_22] : memref<1x128xf32, #tpu.memory_space<vmem>>, vector<1x128xf32>
      %26 = vector.broadcast %25 : vector<1x128xf32> to vector<128x128xf32>
      %27 = arith.addf %24, %26 : vector<128x128xf32>
      %cst_23 = arith.constant 0.000000e+00 : f32
      %28 = vector.broadcast %cst_23 : f32 to vector<128x128xf32>
      %29 = arith.maximumf %27, %28 : vector<128x128xf32>
      %30 = arith.truncf %29 : vector<128x128xf32> to vector<128x128xbf16>
      %c0_24 = arith.constant 0 : index
      %c0_25 = arith.constant 0 : index
      %31 = vector.load %arg9[%c0_24, %c0_25] : memref<128x128xbf16, #tpu.memory_space<vmem>>, vector<128x128xbf16>
      tpu.vector_store %arg9[%c0_24, %c0_25], %30 {strides = array<i32>} : memref<128x128xbf16, #tpu.memory_space<vmem>>, vector<128x128xbf16>,
      %c0_26 = arith.constant 0 : index
      %c0_27 = arith.constant 0 : index
      %32 = vector.load %arg4[%c0_26, %c0_27] : memref<8x128xbf16, #tpu.memory_space<vmem>>, vector<8x128xbf16>
      %cst_28 = arith.constant dense<0.000000e+00> : vector<8x128xf32>
      %33 = tpu.matmul %32, %30, %cst_28 {dimension_numbers = #tpu.dot_dimension_numbers<[1], [0], [0], [1], [0, 0, 1, 1], [], []>} : vector<8x128xbf16>, vector<128x128xbf16>, vector<8x128xf32> -> vector<8x128xf32>
      %34 = vector.shape_cast %33 : vector<8x128xf32> to vector<1x8x128xf32>
      %c0_29 = arith.constant 0 : index
      %c0_30 = arith.constant 0 : index
      %c0_31 = arith.constant 0 : index
      %35 = vector.load %arg10[%c0_29, %c0_30, %c0_31] : memref<1x8x128xf32, #tpu.memory_space<vmem>>, vector<1x8x128xf32>
      tpu.vector_store %arg10[%c0_29, %c0_30, %c0_31], %34 {strides = array<i32>} : memref<1x8x128xf32, #tpu.memory_space<vmem>>, vector<1x8x128xf32>,
    } else {
    }
    return
  }
  func.func @transform_0(%arg0: i32, %arg1: i32) -> (i32, i32) {
    %c0_i32 = arith.constant 0 : i32
    return %arg0, %arg1 : i32, i32
  }
  func.func @transform_1(%arg0: i32, %arg1: i32) -> (i32, i32) {
    %c0_i32 = arith.constant 0 : i32
    %c0_i32_0 = arith.constant 0 : i32
    return %arg1, %c0_i32 : i32, i32
  }
  func.func @transform_2(%arg0: i32, %arg1: i32) -> (i32, i32) {
    %c0_i32 = arith.constant 0 : i32
    %c0_i32_0 = arith.constant 0 : i32
    return %c0_i32, %arg0 : i32, i32
  }
  func.func @transform_3(%arg0: i32, %arg1: i32) -> (i32, i32) {
    %c0_i32 = arith.constant 0 : i32
    %c0_i32_0 = arith.constant 0 : i32
    %c0_i32_1 = arith.constant 0 : i32
    return %c0_i32, %c0_i32_0 : i32, i32
  }
  func.func @transform_4(%arg0: i32, %arg1: i32) -> (i32, i32) {
    %c0_i32 = arith.constant 0 : i32
    %c0_i32_0 = arith.constant 0 : i32
    %c0_i32_1 = arith.constant 0 : i32
    return %c0_i32, %c0_i32_0 : i32, i32
  }
  func.func @transform_5(%arg0: i32, %arg1: i32) -> (i32, i32) {
    %c0_i32 = arith.constant 0 : i32
    %c0_i32_0 = arith.constant 0 : i32
    %c0_i32_1 = arith.constant 0 : i32
    return %c0_i32, %c0_i32_0 : i32, i32
  }
  func.func @transform_6(%arg0: i32, %arg1: i32) -> (i32, i32) {
    %c0_i32 = arith.constant 0 : i32
    %c0_i32_0 = arith.constant 0 : i32
    %c0_i32_1 = arith.constant 0 : i32
    return %c0_i32, %c0_i32_0 : i32, i32
  }
  func.func @transform_7(%arg0: i32, %arg1: i32) -> (i32, i32) {
    %c0_i32 = arith.constant 0 : i32
    %c0_i32_0 = arith.constant 0 : i32
    return %arg0, %c0_i32 : i32, i32
  }
  func.func @transform_8(%arg0: i32, %arg1: i32) -> (i32, i32, i32) {
    %c0_i32 = arith.constant 0 : i32
    %c0_i32_0 = arith.constant 0 : i32
    %c0_i32_1 = arith.constant 0 : i32
    return %arg0, %c0_i32, %c0_i32_0 : i32, i32, i32
  }
}

</mosaic_0001>

<bundles_post_ra>
// kernel: tpu_custom_call.1
= control target key start
LH: loop header
LB: loop body
LE: loop exit
PB: predicated region body
PF: predicated region fallthrough
CT: control target
= control target key end

     0   :  { %14 = vsyncpa [#allocation4], 0  ;;  %s1525_s0 = inlined_call_operand.hbm [shape: s8[128,128], index: 0, kind: input, shape index: {}]   ;;  %s1526_s1 = inlined_call_operand.hbm [shape: bf16[128,128], index: 1, kind: input, shape index: {}]   ;;  %s1527_s2 = inlined_call_operand.vmem [shape: bf16[8,128], index: 2, kind: input, shape index: {}]   ;;  %s1528_s3 = inlined_call_operand.hbm [shape: bf16[128,128], index: 3, kind: input, shape index: {}]   ;;  %s1529_s4 = inlined_call_operand.vmem [shape: f32[1,128], index: 4, kind: input, shape index: {}]   ;;  %s1530_s5 = inlined_call_operand.hbm [shape: bf16[128,128], index: 5, kind: input, shape index: {}]   ;;  %s1531_s6 = inlined_call_operand.vmem [shape: f32[1,128], index: 6, kind: input, shape index: {}]   ;;  %s1532_s7 = inlined_call_operand.hbm [shape: bf16[128,128], index: 7, kind: output, shape index: {0}]   ;;  %s1533_s8 = inlined_call_operand.hbm [shape: f32[1,8,128], index: 8, kind: output, shape index: {1}]  }
   0x1   :  { %15 = vsyncpa [#allocation7], 0 }
   0x2   :  { %16 = vsyncpa [#allocation10], 0 }
   0x3   :  { %17 = vsyncpa [#allocation5], 0 }
   0x4   :  { %18 = vsyncpa [#allocation13], 0  ;;  %s1341_s27 = smov [#allocation6]   ;;  %s1199_s9 = scalar_lea.hbm %s1526_s1, 1024 }
   0x5   :  { %s36_s28 = sshll.u32 %s1341_s27, 4  ;;  %p1200_p0 = scmp.ne.s32.totalorder %s1526_s1, %s1199_s9  ;;  %s37_s28 = int_to_ptr.vmem [resolvable:$true] %s36_s28 }
   0x6   :  { %p1203_p1 = scmp.lt.u32.totalorder %s1199_s9, %s1526_s1 }
   0x8   :  { %p1205_p2 = pnand %p1203_p1, %p1200_p0 }
   0xa   :  { %1208 = shalt.err (!%p1205_p2)
}
   0xb   :  { %s1209_s14 = scalar_lea.vmem %s37_s28, 1024  ;;  %p1214_p4 = scmp.lt.s32.totalorder %s37_s28, %s37_s28 }
   0xc   :  { %p1210_p3 = scmp.ne.s32.totalorder %s37_s28, %s1209_s14  ;;  %p1215_p5 = scmp.lt.s32.totalorder %s1209_s14, %s1209_s14 }
   0xe   :  { %p1216_p6 = por %p1215_p5, %p1214_p4 }
  0x10   :  { %p1217_p7 = pnand %p1216_p6, %p1210_p3 }
  0x12   :  { %1220 = shalt.err (!%p1217_p7)
}
  0x13   :  { %s1342_s15 = smov 64   ;;  %s1343_s16 = smov 4  }
  0x14   :  { %42 = dma.hbm_to_vmem [thread:$0]  %s1526_s1, 1024, %s37_s28, [#allocation7], %s1342_s15, %s1342_s15, %s1343_s16  }
  0x15   :  { %s1344_s19 = smov [#allocation3]   ;;  %s1221_s23 = scalar_lea.hbm %s1525_s0, 512 }
  0x16   :  { %s24_s20 = sshll.u32 %s1344_s19, 4  ;;  %p1222_p8 = scmp.ne.s32.totalorder %s1525_s0, %s1221_s23  ;;  %s25_s20 = int_to_ptr.vmem [resolvable:$true] %s24_s20 }
  0x17   :  { %p1225_p9 = scmp.lt.u32.totalorder %s1221_s23, %s1525_s0 }
  0x19   :  { %p1227_p10 = pnand %p1225_p9, %p1222_p8 }
  0x1b   :  { %1230 = shalt.err (!%p1227_p10)
}
  0x1c   :  { %s1231_s29 = scalar_lea.vmem %s25_s20, 512  ;;  %p1236_p12 = scmp.lt.s32.totalorder %s25_s20, %s25_s20 }
  0x1d   :  { %p1232_p11 = scmp.ne.s32.totalorder %s25_s20, %s1231_s29  ;;  %p1237_p13 = scmp.lt.s32.totalorder %s1231_s29, %s1231_s29 }
  0x1f   :  { %p1238_p0 = por %p1237_p13, %p1236_p12 }
  0x21   :  { %p1239_p1 = pnand %p1238_p0, %p1232_p11 }
  0x23   :  { %1242 = shalt.err (!%p1239_p1)
}
  0x24   :  { %s1345_s1 = smov 128   ;;  %s1346_s28 = smov 8  }
  0x25   :  { %30 = dma.hbm_to_vmem [thread:$0]  %s1525_s0, 512, %s25_s20, [#allocation4], %s1345_s1, %s1345_s1, %s1346_s28  }
  0x26   :  { %s1347_s10 = smov [#allocation8]   ;;  %s1348_s12 = smov [#allocation9]  }
  0x27   :  { %s50_s11 = sshll.u32 %s1347_s10, 4  ;;  %s64_s13 = sshll.u32 %s1348_s12, 4  ;;  %s51_s11 = int_to_ptr.vmem [resolvable:$true] %s50_s11  ;;  %s1425_s13 = int_to_ptr.vmem [resolvable:$true] %s64_s13 }
  0x28   :  { %s1243_s18 = scalar_lea.hbm %s1528_s3, 1024 }
  0x29   :  { %p1244_p2 = scmp.ne.s32.totalorder %s1528_s3, %s1243_s18  ;;  %p1247_p3 = scmp.lt.u32.totalorder %s1243_s18, %s1528_s3 }
  0x2b   :  { %p1249_p4 = pnand %p1247_p3, %p1244_p2 }
  0x2d   :  { %1252 = shalt.err (!%p1249_p4)
}
  0x2e   :  { %s1253_s0 = scalar_lea.vmem %s51_s11, 1024  ;;  %p1258_p6 = scmp.lt.s32.totalorder %s51_s11, %s51_s11 }
  0x2f   :  { %p1254_p5 = scmp.ne.s32.totalorder %s51_s11, %s1253_s0  ;;  %p1259_p7 = scmp.lt.s32.totalorder %s1253_s0, %s1253_s0 }
  0x31   :  { %p1260_p8 = por %p1259_p7, %p1258_p6 }
  0x33   :  { %p1261_p9 = pnand %p1260_p8, %p1254_p5 }
  0x35   :  { %1264 = shalt.err (!%p1261_p9)
}
  0x36   :  { %56 = dma.hbm_to_vmem [thread:$0]  %s1528_s3, 1024, %s51_s11, [#allocation7], %s1342_s15, %s1342_s15, %s1343_s16  }
  0x37   :  { %s1265_s27 = scalar_lea.hbm %s1530_s5, 1024 }
  0x38   :  { %p1266_p10 = scmp.ne.s32.totalorder %s1530_s5, %s1265_s27  ;;  %p1269_p11 = scmp.lt.u32.totalorder %s1265_s27, %s1530_s5 }
  0x3a   :  { %p1271_p12 = pnand %p1269_p11, %p1266_p10 }
  0x3c   :  { %1274 = shalt.err (!%p1271_p12)
}
  0x3d   :  { %s1275_s9 = scalar_lea.vmem %s1425_s13, 1024  ;;  %p1280_p0 = scmp.lt.s32.totalorder %s1425_s13, %s1425_s13 }
  0x3e   :  { %p1276_p13 = scmp.ne.s32.totalorder %s1425_s13, %s1275_s9  ;;  %p1281_p1 = scmp.lt.s32.totalorder %s1275_s9, %s1275_s9 }
  0x40   :  { %p1282_p2 = por %p1281_p1, %p1280_p0 }
  0x42   :  { %p1283_p3 = pnand %p1282_p2, %p1276_p13 }
  0x44   :  { %1286 = shalt.err (!%p1283_p3)
}
  0x45   :  { %70 = dma.hbm_to_vmem [thread:$0]  %s1530_s5, 1024, %s1425_s13, [#allocation10], %s1342_s15, %s1342_s15, %s1343_s16  }
  0x46   :  { %1331 = dma.done.wait [#allocation4], 512  }
  0x47   :  { %1332 = vsyncadd [#allocation4], 4294966784 }
  0x48   :  { %1333 = dma.done.wait [#allocation7], 2048  }
  0x49   :  { %1334 = vsyncadd [#allocation7], 4294965248 }
  0x4a   :  { %1335 = dma.done.wait [#allocation10], 1024  }
  0x4b   :  { %1336 = vsyncadd [#allocation10], 4294966272  ;;  %v1175_v0 = vld [vmem:[#allocation6] sm:$0xff]   ;;  %v1176_v1 = vld [vmem:[#allocation6 + $0x8] sm:$0xff]   ;;  %vm1350_vm0 = vmmov 0   ;;  %s1351_s14 = smov [#allocation11]  }
  0x4c   :  { %1047 = vmatprep.subr.bf16.mxu0 %v1175_v0  ;;  %v1177_v2 = vld [vmem:[#allocation6 + $0x10] sm:$0xff]   ;;  %v1178_v3 = vld [vmem:[#allocation6 + $0x18] sm:$0xff]   ;;  %v106_v4 = vld [vmem:[#allocation3] sm:$0xff]  ;;  %s857_s17 = sshll.u32 %s1351_s14, 4  ;;  %s858_s17 = int_to_ptr.vmem [resolvable:$true] %s857_s17 }
  0x4d   :  { %1048 = vmatpush3.bf16.msra.mxu0 %v1175_v0  ;;  %v110_v5 = vunpack.c.l.s8.bf16 %v106_v4  ;;  %v1183_v6 = vld [vmem:[#allocation8] sm:$0xff]   ;;  %v1184_v7 = vld [vmem:[#allocation8 + $0x8] sm:$0xff]   ;;  %v1185_v9 = vld [vmem:[#allocation8 + $0x10] sm:$0xff]   ;;  %v111_v17 = vunpack.c.h.s8.bf16 %v106_v4  ;;  %s1287_s18 = scalar_lea.vmem %s858_s17, 1024  ;;  %p1292_p5 = scmp.lt.s32.totalorder %s858_s17, %s858_s17 }
  0x4e   :  { %1049 = vmatprep.subr.bf16.mxu0 %v1176_v1  ;;  %v1179_v8 = vld [vmem:[#allocation6 + $0x20] sm:$0xff]   ;;  %1079 = vmatprep.subr.bf16.mxu1 %v1183_v6  ;;  %v1180_v10 = vld [vmem:[#allocation6 + $0x28] sm:$0xff]   ;;  %v1186_v11 = vld [vmem:[#allocation8 + $0x18] sm:$0xff]   ;;  %p1288_p4 = scmp.ne.s32.totalorder %s858_s17, %s1287_s18  ;;  %p1293_p6 = scmp.lt.s32.totalorder %s1287_s18, %s1287_s18 }
  0x4f   :  { %1063 = vmatprep.mubr.bf16.mxu0 %v110_v5  ;;  %1080 = vmatpush3.bf16.msra.mxu1 %v1183_v6  ;;  %v1181_v12 = vld [vmem:[#allocation6 + $0x30] sm:$0xff]   ;;  %v1187_v13 = vld [vmem:[#allocation8 + $0x20] sm:$0xff]   ;;  %v1182_v14 = vld [vmem:[#allocation6 + $0x38] sm:$0xff]  }
  0x50   :  { %1081 = vmatprep.subr.bf16.mxu1 %v1184_v7  ;;  %v1188_v15 = vld [vmem:[#allocation8 + $0x28] sm:$0xff]   ;;  %v1189_v18 = vld [vmem:[#allocation8 + $0x30] sm:$0xff]   ;;  %v109_v23 = vld [vmem:[#allocation3 + $0x18] sm:$0xff]  ;;  %p1294_p7 = por %p1293_p6, %p1292_p5 }
  0x51   :  { %1050 = vmatpush3.bf16.msra.mxu0 %v1176_v1  ;;  %v107_v16 = vld [vmem:[#allocation3 + $0x8] sm:$0xff]  ;;  %v108_v20 = vld [vmem:[#allocation3 + $0x10] sm:$0xff]  ;;  %v116_v25 = vunpack.c.l.s8.bf16 %v109_v23  ;;  %v117_v26 = vunpack.c.h.s8.bf16 %v109_v23  ;;  %v1190_v27 = vld [vmem:[#allocation8 + $0x38] sm:$0xff]  }
  0x52   :  { %1051 = vmatprep.subr.bf16.mxu0 %v1177_v2  ;;  %v112_v19 = vunpack.c.l.s8.bf16 %v107_v16  ;;  %v113_v21 = vunpack.c.h.s8.bf16 %v107_v16  ;;  %v114_v22 = vunpack.c.l.s8.bf16 %v108_v20  ;;  %v115_v24 = vunpack.c.h.s8.bf16 %v108_v20  ;;  %v1191_v28 = vld [vmem:[#allocation9] sm:$0xff]   ;;  %v1192_v29 = vld [vmem:[#allocation9 + $0x8] sm:$0xff]   ;;  %v1193_v30 = vld [vmem:[#allocation9 + $0x10] sm:$0xff]   ;;  %p1295_p8 = pnand %p1294_p7, %p1288_p4 }
  0x53   :  { %1082 = vmatpush3.bf16.msra.mxu1 %v1184_v7  ;;  %v1194_v31 = vld [vmem:[#allocation9 + $0x18] sm:$0xff]   ;;  %v1195_v32 = vld [vmem:[#allocation9 + $0x20] sm:$0xff]   ;;  %v1196_v33 = vld [vmem:[#allocation9 + $0x28] sm:$0xff]  }
  0x54   :  { %1083 = vmatprep.subr.bf16.mxu1 %v1185_v9  ;;  %v1197_v58 = vld [vmem:[#allocation9 + $0x30] sm:$0xff]   ;;  %v1198_v59 = vld [vmem:[#allocation9 + $0x38] sm:$0xff]   ;;  %v893_v60 = vld [vmem:[%s1529_s4] ss:$0 sm:$0xff] }
  0x55   :  { %1052 = vmatpush3.bf16.msra.mxu0 %v1177_v2 }
  0x56   :  { %1053 = vmatprep.subr.bf16.mxu0 %v1178_v3 }
  0x57   :  { %1084 = vmatpush3.bf16.msra.mxu1 %v1185_v9 }
  0x58   :  { %1085 = vmatprep.subr.bf16.mxu1 %v1186_v11 }
  0x59   :  { %1054 = vmatpush3.bf16.msra.mxu0 %v1178_v3 }
  0x5a   :  { %1055 = vmatprep.subr.bf16.mxu0 %v1179_v8 }
  0x5b   :  { %1086 = vmatpush3.bf16.msra.mxu1 %v1186_v11 }
  0x5c   :  { %1087 = vmatprep.subr.bf16.mxu1 %v1187_v13 }
  0x5d   :  { %1056 = vmatpush3.bf16.msra.mxu0 %v1179_v8 }
  0x5e   :  { %1057 = vmatprep.subr.bf16.mxu0 %v1180_v10 }
  0x5f   :  { %1088 = vmatpush3.bf16.msra.mxu1 %v1187_v13 }
  0x60   :  { %1089 = vmatprep.subr.bf16.mxu1 %v1188_v15 }
  0x61   :  { %1058 = vmatpush3.bf16.msra.mxu0 %v1180_v10 }
  0x62   :  { %1059 = vmatprep.subr.bf16.mxu0 %v1181_v12 }
  0x63   :  { %1090 = vmatpush3.bf16.msra.mxu1 %v1188_v15 }
  0x64   :  { %1091 = vmatprep.subr.bf16.mxu1 %v1189_v18 }
  0x65   :  { %1060 = vmatpush3.bf16.msra.mxu0 %v1181_v12 }
  0x66   :  { %1061 = vmatprep.subr.bf16.mxu0 %v1182_v14 }
  0x67   :  { %1092 = vmatpush3.bf16.msra.mxu1 %v1189_v18 }
  0x68   :  { %1093 = vmatprep.subr.bf16.mxu1 %v1190_v27 }
  0x69   :  { %1062 = vmatpush3.bf16.msra.mxu0 %v1182_v14 }
  0x6a   :  { %1111 = vmatprep.subr.bf16.mxu0 %v1191_v28 }
  0x6b   :  { %1094 = vmatpush3.bf16.msra.mxu1 %v1190_v27 }
  0x6c   :  { %1064 = vmatmul.mubr.bf16.vlgmr.msra.gmra.mrb[0].mxu0 %v111_v17 }
  0x6d   :  { %1067 = vmatprep.mubr.bf16.mxu0 %v112_v19  ;;  %1112 = vmatpush3.bf16.msra.mxu0 %v1191_v28 }
  0x6e   :  { %1113 = vmatprep.subr.bf16.mxu0 %v1192_v29 }
  0x71   :  { %1114 = vmatpush3.bf16.msra.mxu0 %v1192_v29 }
  0x72   :  { %1115 = vmatprep.subr.bf16.mxu0 %v1193_v30 }
  0x74   :  { %1068 = vmatmul.mubr.bf16.gmra.mrb[4].mxu0 %v113_v21 }
  0x75   :  { %1071 = vmatprep.mubr.bf16.mxu0 %v114_v22  ;;  %1116 = vmatpush3.bf16.msra.mxu0 %v1193_v30 }
  0x76   :  { %1117 = vmatprep.subr.bf16.mxu0 %v1194_v31 }
  0x79   :  { %1118 = vmatpush3.bf16.msra.mxu0 %v1194_v31 }
  0x7a   :  { %1119 = vmatprep.subr.bf16.mxu0 %v1195_v32 }
  0x7c   :  { %1072 = vmatmul.mubr.bf16.gmra.mrb[8].mxu0 %v115_v24 }
  0x7d   :  { %1075 = vmatprep.mubr.bf16.mxu0 %v116_v25  ;;  %1120 = vmatpush3.bf16.msra.mxu0 %v1195_v32 }
  0x7e   :  { %1121 = vmatprep.subr.bf16.mxu0 %v1196_v33 }
  0x81   :  { %1122 = vmatpush3.bf16.msra.mxu0 %v1196_v33 }
  0x82   :  { %1123 = vmatprep.subr.bf16.mxu0 %v1197_v58 }
  0x84   :  { %1076 = vmatmul.mubr.bf16.gmra.mrb[12].mxu0 %v117_v26 }
  0x85   :  { %1124 = vmatpush3.bf16.msra.mxu0 %v1197_v58 }
  0x86   :  { %1125 = vmatprep.subr.bf16.mxu0 %v1198_v59 }
  0x89   :  { %1126 = vmatpush3.bf16.msra.mxu0 %v1198_v59 }
 0x13f   :  { %v1065_v34 = vpop.f32.mrb[0].mxu0 }
 0x140   :  { %v232_v35 = vpop.f32.mrb[1].mxu0 }
 0x141   :  { %v1066_v36 = vpop.f32.mrb[2].mxu0 }
 0x142   :  { %v347_v37 = vpack.c.bf16 %v1066_v36, %v1065_v34  ;;  %v235_v38 = vpop.f32.mrb[3].mxu0 }
 0x143   :  { %v346_v39 = vpack.c.bf16 %v235_v38, %v232_v35 }
 0x145   :  { %1095 = vmatprep.mubr.bf16.mxu1 %v346_v39 }
 0x146   :  { %1096 = vmatmul.mubr.bf16.vlgmr.msra.gmra.mrb[0].mxu1 %v347_v37 }
 0x147   :  { %v1069_v40 = vpop.f32.mrb[4].mxu0 }
 0x148   :  { %v248_v41 = vpop.f32.mrb[5].mxu0 }
 0x149   :  { %v1070_v42 = vpop.f32.mrb[6].mxu0 }
 0x14a   :  { %v349_v43 = vpack.c.bf16 %v1070_v42, %v1069_v40  ;;  %v251_v44 = vpop.f32.mrb[7].mxu0 }
 0x14b   :  { %v348_v45 = vpack.c.bf16 %v251_v44, %v248_v41 }
 0x14d   :  { %1099 = vmatprep.mubr.bf16.mxu1 %v348_v45 }
 0x14e   :  { %1100 = vmatmul.mubr.bf16.gmra.mrb[4].mxu1 %v349_v43 }
 0x14f   :  { %v1073_v46 = vpop.f32.mrb[8].mxu0 }
 0x150   :  { %v264_v47 = vpop.f32.mrb[9].mxu0 }
 0x151   :  { %v1074_v48 = vpop.f32.mrb[10].mxu0 }
 0x152   :  { %v351_v49 = vpack.c.bf16 %v1074_v48, %v1073_v46  ;;  %v267_v50 = vpop.f32.mrb[11].mxu0 }
 0x153   :  { %v350_v51 = vpack.c.bf16 %v267_v50, %v264_v47 }
 0x155   :  { %1103 = vmatprep.mubr.bf16.mxu1 %v350_v51 }
 0x156   :  { %1104 = vmatmul.mubr.bf16.gmra.mrb[8].mxu1 %v351_v49 }
 0x157   :  { %v1077_v52 = vpop.f32.mrb[12].mxu0 }
 0x158   :  { %v280_v53 = vpop.f32.mrb[13].mxu0 }
 0x159   :  { %v1078_v54 = vpop.f32.mrb[14].mxu0 }
 0x15a   :  { %v353_v55 = vpack.c.bf16 %v1078_v54, %v1077_v52  ;;  %v283_v56 = vpop.f32.mrb[15].mxu0  ;;  %v1470_v54 = vld [vmem:[%s1531_s6] ss:$0 sm:$0xff] }
 0x15b   :  { %v352_v57 = vpack.c.bf16 %v283_v56, %v280_v53  ;;  %v1349_v53 = vmov 0.0  }
 0x15c   :  { %1143 = vmatprep.subr.bf16.mxu1 %v1349_v53 }
 0x15d   :  { %1107 = vmatprep.mubr.bf16.mxu1 %v352_v57 }
 0x15e   :  { %1108 = vmatmul.mubr.bf16.gmra.mrb[12].mxu1 %v353_v55 }
 0x15f   :  { %1159 = vmatprep.mubr.msk.bf16.mxu1 %vm1350_vm0, %v1349_v53 }
 0x219   :  { %v1097_v61 = vpop.f32.mrb[0].mxu1 }
 0x21a   :  { %v468_v62 = vadd.f32 %v1097_v61, %v893_v60  ;;  %v459_v63 = vpop.f32.mrb[1].mxu1 }
 0x21b   :  { %v460_v0 = vadd.f32 %v893_v60, %v459_v63  ;;  %v1098_v1 = vpop.f32.mrb[2].mxu1 }
 0x21c   :  { %v471_v2 = vadd.f32 %v1098_v1, %v893_v60  ;;  %v462_v3 = vpop.f32.mrb[3].mxu1  ;;  %v524_v5 = vmax.f32 %v468_v62, 0.0 }
 0x21d   :  { %v463_v4 = vadd.f32 %v893_v60, %v462_v3  ;;  %v522_v7 = vmax.f32 %v460_v0, 0.0 }
 0x21e   :  { %v525_v6 = vmax.f32 %v471_v2, 0.0 }
 0x21f   :  { %v523_v8 = vmax.f32 %v463_v4, 0.0 }
 0x220   :  { %v539_v9 = vpack.c.bf16 %v525_v6, %v524_v5 }
 0x221   :  { %v538_v10 = vpack.c.bf16 %v523_v8, %v522_v7  ;;  %v1101_v11 = vpop.f32.mrb[4].mxu1 }
 0x222   :  { %v484_v12 = vadd.f32 %v1101_v11, %v893_v60  ;;  %v475_v13 = vpop.f32.mrb[5].mxu1 }
 0x223   :  { %v476_v14 = vadd.f32 %v893_v60, %v475_v13  ;;  %v1102_v15 = vpop.f32.mrb[6].mxu1  ;;  %1127 = vmatprep.mubr.bf16.mxu0 %v538_v10 }
 0x224   :  { %v487_v16 = vadd.f32 %v1102_v15, %v893_v60  ;;  %v478_v17 = vpop.f32.mrb[7].mxu1  ;;  %1128 = vmatmul.mubr.bf16.vlgmr.msra.gmra.mrb[16].mxu0 %v539_v9  ;;  %v528_v19 = vmax.f32 %v484_v12, 0.0 }
 0x225   :  { %v479_v18 = vadd.f32 %v893_v60, %v478_v17  ;;  %v526_v21 = vmax.f32 %v476_v14, 0.0 }
 0x226   :  { %v529_v20 = vmax.f32 %v487_v16, 0.0 }
 0x227   :  { %v527_v22 = vmax.f32 %v479_v18, 0.0 }
 0x228   :  { %v541_v23 = vpack.c.bf16 %v529_v20, %v528_v19 }
 0x229   :  { %v540_v24 = vpack.c.bf16 %v527_v22, %v526_v21  ;;  %v1105_v25 = vpop.f32.mrb[8].mxu1 }
 0x22a   :  { %v500_v26 = vadd.f32 %v1105_v25, %v893_v60  ;;  %v491_v27 = vpop.f32.mrb[9].mxu1 }
 0x22b   :  { %v492_v28 = vadd.f32 %v893_v60, %v491_v27  ;;  %v1106_v29 = vpop.f32.mrb[10].mxu1  ;;  %1131 = vmatprep.mubr.bf16.mxu0 %v540_v24 }
 0x22c   :  { %v503_v30 = vadd.f32 %v1106_v29, %v893_v60  ;;  %v494_v31 = vpop.f32.mrb[11].mxu1  ;;  %1132 = vmatmul.mubr.bf16.gmra.mrb[20].mxu0 %v541_v23  ;;  %v532_v33 = vmax.f32 %v500_v26, 0.0 }
 0x22d   :  { %v495_v32 = vadd.f32 %v893_v60, %v494_v31  ;;  %v530_v35 = vmax.f32 %v492_v28, 0.0 }
 0x22e   :  { %v533_v34 = vmax.f32 %v503_v30, 0.0 }
 0x22f   :  { %v531_v36 = vmax.f32 %v495_v32, 0.0 }
 0x230   :  { %v543_v37 = vpack.c.bf16 %v533_v34, %v532_v33 }
 0x231   :  { %v542_v38 = vpack.c.bf16 %v531_v36, %v530_v35  ;;  %v1109_v39 = vpop.f32.mrb[12].mxu1 }
 0x232   :  { %v516_v40 = vadd.f32 %v1109_v39, %v893_v60  ;;  %v507_v41 = vpop.f32.mrb[13].mxu1 }
 0x233   :  { %v508_v42 = vadd.f32 %v893_v60, %v507_v41  ;;  %v1110_v43 = vpop.f32.mrb[14].mxu1  ;;  %1135 = vmatprep.mubr.bf16.mxu0 %v542_v38 }
 0x234   :  { %v519_v44 = vadd.f32 %v1110_v43, %v893_v60  ;;  %v510_v45 = vpop.f32.mrb[15].mxu1  ;;  %1136 = vmatmul.mubr.bf16.gmra.mrb[24].mxu0 %v543_v37  ;;  %v536_v47 = vmax.f32 %v516_v40, 0.0 }
 0x235   :  { %v511_v46 = vadd.f32 %v893_v60, %v510_v45  ;;  %v534_v49 = vmax.f32 %v508_v42, 0.0 }
 0x236   :  { %v537_v48 = vmax.f32 %v519_v44, 0.0 }
 0x237   :  { %v535_v50 = vmax.f32 %v511_v46, 0.0 }
 0x238   :  { %v545_v51 = vpack.c.bf16 %v537_v48, %v536_v47  ;;  %v810_v47 = vld [vmem:[%s1527_s2] sm:$0xf] }
 0x239   :  { %v544_v52 = vpack.c.bf16 %v535_v50, %v534_v49 }
 0x23b   :  { %1139 = vmatprep.mubr.bf16.mxu0 %v544_v52 }
 0x23c   :  { %1140 = vmatmul.mubr.bf16.gmra.mrb[28].mxu0 %v545_v51 }
 0x2f7   :  { %v1129_v55 = vpop.f32.mrb[16].mxu0 }
 0x2f8   :  { %v660_v56 = vadd.f32 %v1129_v55, %v1470_v54  ;;  %v651_v57 = vpop.f32.mrb[17].mxu0 }
 0x2f9   :  { %v652_v58 = vadd.f32 %v1470_v54, %v651_v57  ;;  %v1130_v59 = vpop.f32.mrb[18].mxu0 }
 0x2fa   :  { %v663_v60 = vadd.f32 %v1130_v59, %v1470_v54  ;;  %v654_v61 = vpop.f32.mrb[19].mxu0  ;;  %v716_v63 = vmax.f32 %v660_v56, 0.0 }
 0x2fb   :  { %v655_v62 = vadd.f32 %v1470_v54, %v654_v61  ;;  %v714_v1 = vmax.f32 %v652_v58, 0.0 }
 0x2fc   :  { %v717_v0 = vmax.f32 %v663_v60, 0.0 }
 0x2fd   :  { %v715_v2 = vmax.f32 %v655_v62, 0.0 }
 0x2fe   :  { %v731_v3 = vpack.c.bf16 %v717_v0, %v716_v63 }
 0x2ff   :  { %v730_v4 = vpack.c.bf16 %v715_v2, %v714_v1  ;;  %v1133_v5 = vpop.f32.mrb[20].mxu0 }
 0x300   :  { %983 = vst [vmem:[#allocation11 + $0x8] sm:$0xff] %v731_v3   ;;  %v676_v6 = vadd.f32 %v1133_v5, %v1470_v54  ;;  %v667_v7 = vpop.f32.mrb[21].mxu0 }
 0x301   :  { %947 = vst [vmem:[#allocation11] sm:$0xff] %v730_v4   ;;  %v668_v8 = vadd.f32 %v1470_v54, %v667_v7  ;;  %v1134_v9 = vpop.f32.mrb[22].mxu0  ;;  %1144 = vmatpush3.bf16.msra.mxu1 %v730_v4 }
 0x302   :  { %v679_v10 = vadd.f32 %v1134_v9, %v1470_v54  ;;  %v670_v11 = vpop.f32.mrb[23].mxu0  ;;  %1145 = vmatprep.subr.bf16.mxu1 %v1349_v53  ;;  %v720_v13 = vmax.f32 %v676_v6, 0.0 }
 0x303   :  { %v671_v12 = vadd.f32 %v1470_v54, %v670_v11  ;;  %v718_v15 = vmax.f32 %v668_v8, 0.0 }
 0x304   :  { %v721_v14 = vmax.f32 %v679_v10, 0.0 }
 0x305   :  { %v719_v16 = vmax.f32 %v671_v12, 0.0  ;;  %1146 = vmatpush3.bf16.msra.mxu1 %v731_v3 }
 0x306   :  { %v733_v17 = vpack.c.bf16 %v721_v14, %v720_v13  ;;  %1147 = vmatprep.subr.bf16.mxu1 %v1349_v53 }
 0x307   :  { %v732_v18 = vpack.c.bf16 %v719_v16, %v718_v15  ;;  %v1137_v19 = vpop.f32.mrb[24].mxu0 }
 0x308   :  { %985 = vst [vmem:[#allocation11 + $0x18] sm:$0xff] %v733_v17   ;;  %v692_v20 = vadd.f32 %v1137_v19, %v1470_v54  ;;  %v683_v21 = vpop.f32.mrb[25].mxu0 }
 0x309   :  { %984 = vst [vmem:[#allocation11 + $0x10] sm:$0xff] %v732_v18   ;;  %v684_v22 = vadd.f32 %v1470_v54, %v683_v21  ;;  %v1138_v23 = vpop.f32.mrb[26].mxu0  ;;  %1148 = vmatpush3.bf16.msra.mxu1 %v732_v18 }
 0x30a   :  { %v695_v24 = vadd.f32 %v1138_v23, %v1470_v54  ;;  %v686_v25 = vpop.f32.mrb[27].mxu0  ;;  %1149 = vmatprep.subr.bf16.mxu1 %v1349_v53  ;;  %v724_v27 = vmax.f32 %v692_v20, 0.0 }
 0x30b   :  { %v687_v26 = vadd.f32 %v1470_v54, %v686_v25  ;;  %v722_v29 = vmax.f32 %v684_v22, 0.0 }
 0x30c   :  { %v725_v28 = vmax.f32 %v695_v24, 0.0 }
 0x30d   :  { %v723_v30 = vmax.f32 %v687_v26, 0.0  ;;  %1150 = vmatpush3.bf16.msra.mxu1 %v733_v17 }
 0x30e   :  { %v735_v31 = vpack.c.bf16 %v725_v28, %v724_v27  ;;  %1151 = vmatprep.subr.bf16.mxu1 %v1349_v53 }
 0x30f   :  { %v734_v32 = vpack.c.bf16 %v723_v30, %v722_v29  ;;  %v1141_v33 = vpop.f32.mrb[28].mxu0 }
 0x310   :  { %987 = vst [vmem:[#allocation11 + $0x28] sm:$0xff] %v735_v31   ;;  %v708_v34 = vadd.f32 %v1141_v33, %v1470_v54  ;;  %v699_v35 = vpop.f32.mrb[29].mxu0 }
 0x311   :  { %986 = vst [vmem:[#allocation11 + $0x20] sm:$0xff] %v734_v32   ;;  %v700_v36 = vadd.f32 %v1470_v54, %v699_v35  ;;  %v1142_v37 = vpop.f32.mrb[30].mxu0  ;;  %1152 = vmatpush3.bf16.msra.mxu1 %v734_v32 }
 0x312   :  { %v711_v38 = vadd.f32 %v1142_v37, %v1470_v54  ;;  %v702_v39 = vpop.f32.mrb[31].mxu0  ;;  %1153 = vmatprep.subr.bf16.mxu1 %v1349_v53  ;;  %v728_v41 = vmax.f32 %v708_v34, 0.0 }
 0x313   :  { %v703_v40 = vadd.f32 %v1470_v54, %v702_v39  ;;  %v726_v43 = vmax.f32 %v700_v36, 0.0 }
 0x314   :  { %v729_v42 = vmax.f32 %v711_v38, 0.0 }
 0x315   :  { %v727_v44 = vmax.f32 %v703_v40, 0.0  ;;  %1154 = vmatpush3.bf16.msra.mxu1 %v735_v31 }
 0x316   :  { %v737_v45 = vpack.c.bf16 %v729_v42, %v728_v41  ;;  %1155 = vmatprep.subr.bf16.mxu1 %v1349_v53 }
 0x317   :  { %v736_v46 = vpack.c.bf16 %v727_v44, %v726_v43 }
 0x318   :  { %989 = vst [vmem:[#allocation11 + $0x38] sm:$0xff] %v737_v45  }
 0x319   :  { %988 = vst [vmem:[#allocation11 + $0x30] sm:$0xff] %v736_v46   ;;  %1156 = vmatpush3.bf16.msra.mxu1 %v736_v46 }
 0x31a   :  { %1157 = vmatprep.subr.bf16.mxu1 %v1349_v53 }
 0x31d   :  { %1158 = vmatpush3.bf16.msra.mxu1 %v737_v45 }
 0x320   :  { %1160 = vmatmul.mubr.bf16.vlgmr.msra.gmra.mrb[16].mxu1 %v810_v47 }
 0x321   :  { %1298 = shalt.err (!%p1295_p8)
}
 0x322   :  { %s1299_s22 = scalar_lea.hbm %s1532_s7, 1024 }
 0x323   :  { %p1300_p9 = scmp.ne.s32.totalorder %s1532_s7, %s1299_s22  ;;  %p1303_p10 = scmp.lt.u32.totalorder %s1299_s22, %s1532_s7 }
 0x325   :  { %p1305_p11 = pnand %p1303_p10, %p1300_p9 }
 0x327   :  { %1308 = shalt.err (!%p1305_p11)
}
 0x328   :  { %863 = dma.vmem_to_hbm [thread:$0]  %s858_s17, 1024, %s1532_s7, [#allocation5], %s1342_s15, %s1342_s15, %s1343_s16  }
 0x329   :  { %s1352_s26 = smov [#allocation12]  }
 0x32a   :  { %s870_s27 = sshll.u32 %s1352_s26, 4  ;;  %s871_s27 = int_to_ptr.vmem [resolvable:$true] %s870_s27 }
 0x32b   :  { %s1309_s29 = scalar_lea.vmem %s871_s27, 128  ;;  %p1314_p13 = scmp.lt.s32.totalorder %s871_s27, %s871_s27 }
 0x32c   :  { %p1310_p12 = scmp.ne.s32.totalorder %s871_s27, %s1309_s29  ;;  %p1315_p0 = scmp.lt.s32.totalorder %s1309_s29, %s1309_s29 }
 0x32e   :  { %p1316_p1 = por %p1315_p0, %p1314_p13 }
 0x330   :  { %p1317_p2 = pnand %p1316_p1, %p1310_p12 }
 0x3f3   :  { %v845_v48 = vpop.f32.mrb[16].mxu1 }
 0x3f4   :  { %851 = vst [vmem:[#allocation12] sm:$0xff] %v845_v48  ;;  %v1161_v49 = vpop.f32.mrb[17].mxu1 }
 0x3f5   :  { %v848_v50 = vpop.f32.mrb[18].mxu1 }
 0x3f6   :  { %1320 = shalt.err (!%p1317_p2)
}
 0x3f7   :  { %s1321_s30 = scalar_lea.hbm %s1533_s8, 128 }
 0x3f8   :  { %p1322_p3 = scmp.ne.s32.totalorder %s1533_s8, %s1321_s30  ;;  %p1325_p4 = scmp.lt.u32.totalorder %s1321_s30, %s1533_s8 }
 0x3fa   :  { %p1327_p5 = pnand %p1325_p4, %p1322_p3 }
 0x3fc   :  { %1330 = shalt.err (!%p1327_p5)
}
 0x3fd   :  { %873 = dma.vmem_to_hbm [thread:$0]  %s871_s27, 128, %s1533_s8, [#allocation13]   ;;  %v1162_v51 = vpop.f32.mrb[19].mxu1 }
 0x3fe   :  { %1337 = dma.done.wait [#allocation5], 1024  }
 0x3ff   :  { %1338 = vsyncadd [#allocation5], 4294966272 }
 0x400   :  { %1339 = dma.done.wait [#allocation13], 128  }
 0x401   :  { %1340 = vsyncadd [#allocation13], 4294967168 }
 0x402   :  { %880 = vsyncpa [#allocation4], 1 }
 0x403   :  { %881 = vsyncpa [#allocation7], 1 }
 0x404   :  { %882 = vsyncpa [#allocation10], 1 }
 0x405   :  { %883 = vsyncpa [#allocation5], 1 }
 0x406   :  { %884 = vsyncpa [#allocation13], 1 }

</bundles_post_ra>
